<compile_context>
chip_gen: v6e
topology: v6e:2x2x1
jax: 0.10.0
libtpu: 0.0.40
codegen_flags: <defaults>
</compile_context>

<pallas_src>
import functools

import jax
import jax.numpy as jnp
from jax import lax
from jax.experimental import pallas as pl
from jax.experimental.pallas import tpu as pltpu


# ---------------------------------------------------------------------------
# Fused single pass: pool -> excite -> rescale, per batch-block.
# x_ref / o_ref: (TB, C, HW); w1_ref: (C, Cr); w2_ref: (Cr, C).
# ---------------------------------------------------------------------------
def _se_fused_kernel(x_ref, w1_ref, w2_ref, o_ref, *, inv_hw, chunk):
    tb, c, hw = x_ref.shape
    n_full = hw // chunk
    rem = hw - n_full * chunk

    # ---- squeeze: f32-accumulated sum over the lane (HW) axis, chunked ----
    def pool_chunk(off, size):
        return jnp.sum(x_ref[:, :, pl.ds(off, size)].astype(jnp.float32), axis=2)

    acc = jnp.zeros((tb, c), jnp.float32)
    if n_full > 1:
        def pool_body(i, a):
            off = pl.multiple_of(i * chunk, chunk)
            return a + pool_chunk(off, chunk)
        acc = lax.fori_loop(0, n_full, pool_body, acc)
    elif n_full == 1:
        acc = pool_chunk(0, chunk)
    if rem:
        acc = acc + pool_chunk(n_full * chunk, rem)

    pooled = acc * inv_hw                                                  # (TB, C) f32

    # ---- excitation: Linear -> ReLU -> Linear -> Sigmoid (bias-free) ----
    h = jnp.maximum(
        jnp.dot(pooled.astype(w1_ref.dtype), w1_ref[...],
                preferred_element_type=jnp.float32), 0.0)                  # (TB, Cr)
    s = jnp.dot(h.astype(w2_ref.dtype), w2_ref[...],
                preferred_element_type=jnp.float32)                        # (TB, C)
    gate = jax.nn.sigmoid(s)[:, :, None]                                   # (TB, C, 1) f32

    # ---- scale: second (chunked) read of x, f32 multiply, cast at store ----
    def scale_chunk(off, size):
        o_ref[:, :, pl.ds(off, size)] = (
            x_ref[:, :, pl.ds(off, size)] * gate).astype(o_ref.dtype)

    if n_full > 1:
        def scale_body(i, carry):
            off = pl.multiple_of(i * chunk, chunk)
            scale_chunk(off, chunk)
            return carry
        lax.fori_loop(0, n_full, scale_body, 0)
    elif n_full == 1:
        scale_chunk(0, chunk)
    if rem:
        scale_chunk(n_full * chunk, rem)


# ---------------------------------------------------------------------------
# Two-pass path (small B or large spatial slabs).
# Pass 1: pool over HW tiles + tiny excitation -> per-batch f32 gate (B, C, 1).
# ---------------------------------------------------------------------------
def _pool_excite_kernel(x_ref, w1_ref, w2_ref, gate_ref, acc_ref, *,
                        inv_hw, hw, thw, need_mask):
    t = pl.program_id(1)

    @pl.when(t == 0)
    def _():
        acc_ref[...] = jnp.zeros_like(acc_ref)

    xv = x_ref[...].astype(jnp.float32)                                    # (1, C, THW)
    if need_mask:
        lane = lax.broadcasted_iota(jnp.int32, xv.shape, 2)
        xv = jnp.where(lane < (hw - t * thw), xv, 0.0)                     # ragged tail
    acc_ref[...] += jnp.sum(xv, axis=2)                                    # (1, C)

    @pl.when(t == pl.num_programs(1) - 1)
    def _():
        pooled = acc_ref[...] * inv_hw                                     # (1, C)
        h = jnp.maximum(
            jnp.dot(pooled.astype(w1_ref.dtype), w1_ref[...],
                    preferred_element_type=jnp.float32), 0.0)
        s = jnp.dot(h.astype(w2_ref.dtype), w2_ref[...],
                    preferred_element_type=jnp.float32)
        gate_ref[...] = jax.nn.sigmoid(s)[:, :, None]                      # f32 gate


def _rescale_kernel(x_ref, gate_ref, o_ref):
    # x_ref / o_ref: (1, C, THW); gate_ref: (1, C, 1) f32 -> f32 multiply.
    o_ref[...] = (x_ref[...] * gate_ref[...]).astype(o_ref.dtype)


# ---------------------------------------------------------------------------
# Wrapper.
# ---------------------------------------------------------------------------
def _chip_vmem_bytes():
    try:
        v = getattr(pltpu.get_tpu_info(), "vmem_capacity_bytes", None)
        if v:
            return int(v)
    except Exception:
        pass
    return 64 << 20      # conservative: safe on v5e/v6e (128 MiB) and v7x (64 MiB)


def _clamp_vmem(need_bytes, chip_vmem_bytes):
    cap = int(0.85 * chip_vmem_bytes)
    return int(min(max(int(need_bytes), 4 << 20), cap))


def _pick_thw(avail_bytes, per_lane_bytes, hw, target_tiles):
    """Largest HW tile (multiple of 128, or == hw) fitting avail_bytes."""
    if hw <= 128:
        return hw
    t = hw if per_lane_bytes <= 0 else int(avail_bytes // per_lane_bytes)
    t = min(t, hw)
    if target_tiles > 1:
        t = min(t, -(-hw // target_tiles))
    if t >= hw:
        return hw
    return max(128, (t // 128) * 128)


def se_layer(x, w1, w2, *, vmem_budget_bytes=None):
    """SE forward.  x: (B, C, H, W); w1: (C, C//r); w2: (C//r, C).

    w1/w2 are the transposed PyTorch Linear weights (PyTorch computes
    y = x @ W.T; we store W.T directly).
    """
    B, C, H, W = x.shape
    HW = H * W
    Cr = w1.shape[1]
    itemsize = x.dtype.itemsize
    w_bytes = 2 * (C * Cr + Cr * C) * w1.dtype.itemsize   # double-buffered weights
    headroom = 2 << 20

    chip_vmem = _chip_vmem_bytes()
    if vmem_budget_bytes is None:
        vmem_budget_bytes = int(0.80 * chip_vmem)
    budget = min(int(vmem_budget_bytes), int(0.85 * chip_vmem))

    # Native channel-major layout; this reshape is a free view (no HBM copy).
    x3 = x.reshape(B, C, HW)

    slab = C * HW * itemsize                       # one batch element's (C, HW) slab
    chunk = min(1024, HW)                          # in-kernel lane chunk for the fused path
    f32_chunk = C * chunk * 4                      # per-TB-row f32 chunk temp
    per_tb_fused = 4 * slab + 3 * f32_chunk        # dbl-buffered in+out + temp slack

    # ---------------- fused single pass (1 read + 1 write of x) ----------------
    if B >= 4 and per_tb_fused + w_bytes + headroom <= budget:
        tb_cap = max(1, (budget - w_bytes - headroom) // per_tb_fused)
        tb_cap = min(tb_cap, B // 4)               # keep >= 4 grid steps
        TB = max(d for d in range(1, int(tb_cap) + 1) if B % d == 0)
        grid = (B // TB,)

        out = pl.pallas_call(
            functools.partial(_se_fused_kernel, inv_hw=1.0 / HW, chunk=chunk),
            out_shape=jax.ShapeDtypeStruct((B, C, HW), x.dtype),
            grid_spec=pltpu.PrefetchScalarGridSpec(
                num_scalar_prefetch=0,
                grid=grid,
                in_specs=[
                    pl.BlockSpec((TB, C, HW), lambda b: (b, 0, 0)),
                    pl.BlockSpec((C, Cr), lambda b: (0, 0)),
                    pl.BlockSpec((Cr, C), lambda b: (0, 0)),
                ],
                out_specs=pl.BlockSpec((TB, C, HW), lambda b: (b, 0, 0)),
            ),
            compiler_params=pltpu.CompilerParams(
                dimension_semantics=("parallel",),
                vmem_limit_bytes=_clamp_vmem(
                    TB * per_tb_fused + w_bytes + headroom, chip_vmem),
            ),
        )(x3, w1, w2)
        return out.reshape(B, C, H, W)

    # ---------------- two-pass HW-tiled path ----------------
    target_tiles = max(1, -(-4 // B))              # aim for >= 4 total grid steps

    # Pass 1: only x is large & pipelined (2x input + one f32 temp per lane col).
    thw1 = _pick_thw(budget - w_bytes - headroom, C * (2 * itemsize + 4), HW,
                     target_tiles)
    n1 = -(-HW // thw1)
    gate = pl.pallas_call(
        functools.partial(_pool_excite_kernel, inv_hw=1.0 / HW, hw=HW, thw=thw1,
                          need_mask=(HW % thw1 != 0)),
        out_shape=jax.ShapeDtypeStruct((B, C, 1), jnp.float32),
        grid_spec=pltpu.PrefetchScalarGridSpec(
            num_scalar_prefetch=0,
            grid=(B, n1),
            in_specs=[
                pl.BlockSpec((1, C, thw1), lambda b, t: (b, 0, t)),
                pl.BlockSpec((C, Cr), lambda b, t: (0, 0)),
                pl.BlockSpec((Cr, C), lambda b, t: (0, 0)),
            ],
            out_specs=pl.BlockSpec((1, C, 1), lambda b, t: (b, 0, 0)),
            scratch_shapes=[pltpu.VMEM((1, C), jnp.float32)],
        ),
        compiler_params=pltpu.CompilerParams(
            dimension_semantics=("parallel", "arbitrary"),
            vmem_limit_bytes=_clamp_vmem(
                C * thw1 * (2 * itemsize + 4) + w_bytes + headroom, chip_vmem),
        ),
    )(x3, w1, w2)

    # Pass 2: channel-wise rescale (2x in + 2x out + f32 product temp).
    thw2 = _pick_thw(budget - headroom, C * (4 * itemsize + 4), HW, target_tiles)
    n2 = -(-HW // thw2)
    out = pl.pallas_call(
        _rescale_kernel,
        out_shape=jax.ShapeDtypeStruct((B, C, HW), x.dtype),
        grid_spec=pltpu.PrefetchScalarGridSpec(
            num_scalar_prefetch=0,
            grid=(B, n2),
            in_specs=[
                pl.BlockSpec((1, C, thw2), lambda b, t: (b, 0, t)),
                pl.BlockSpec((1, C, 1), lambda b, t: (b, 0, 0)),
            ],
            out_specs=pl.BlockSpec((1, C, thw2), lambda b, t: (b, 0, t)),
        ),
        compiler_params=pltpu.CompilerParams(
            dimension_semantics=("parallel", "parallel"),
            vmem_limit_bytes=_clamp_vmem(
                C * thw2 * (4 * itemsize + 4) + headroom, chip_vmem),
        ),
    )(x3, gate)
    return out.reshape(B, C, H, W)


# ---------------------------------------------------------------------------
# Pure-JAX reference of the PyTorch forward pass.
# ---------------------------------------------------------------------------
def reference_se(x, w1, w2):
    pooled = jnp.mean(x.astype(jnp.float32), axis=(2, 3))                  # (B, C)
    h = jnp.maximum(pooled @ w1.astype(jnp.float32), 0.0)
    s = jax.nn.sigmoid(h @ w2.astype(jnp.float32))                         # (B, C)
    return (x.astype(jnp.float32) * s[:, :, None, None]).astype(x.dtype)


if __name__ == "__main__":
    key = jax.random.PRNGKey(0)

    def run_case(B, C, H, W, reduction=4):
        Cr = max(1, C // reduction)
        k = jax.random.fold_in(key, B * 100000 + C * 1000 + H * 10 + W)
        kx, k1, k2 = jax.random.split(k, 3)
        x = jax.random.normal(kx, (B, C, H, W), dtype=jnp.float32)
        # PyTorch Linear(channel, channel//reduction).weight is (Cr, C) and
        # computes y = x @ W.T; we store the transposed weights directly.
        w1 = jax.random.normal(k1, (C, Cr), dtype=jnp.float32) * (1.0 / jnp.sqrt(C))
        w2 = jax.random.normal(k2, (Cr, C), dtype=jnp.float32) * (1.0 / jnp.sqrt(Cr))
        out = jax.block_until_ready(se_layer(x, w1, w2))
        ref = reference_se(x, w1, w2)
        assert out.shape == x.shape, (out.shape, x.shape)
        assert jnp.allclose(out, ref, atol=2e-5, rtol=2e-5), \
            f"mismatch for shape {(B, C, H, W)}"

    # Two-pass HW-tiled path (B < 4; 128-lane tiles -> (2, 2) grids).
    run_case(2, 8, 16, 16)
    # Fused per-batch-block path (B >= 4 -> TB = 2, 4 grid steps).
    run_case(8, 8, 8, 8)
    # Two-pass with a ragged last HW tile (exercises the iota mask).
    run_case(1, 8, 12, 12)

    print("KERNEL_OK")
</pallas_src>

<mosaic_0001>
module attributes {stable_mosaic.version = 11 : i64} {
  func.func @_pool_excite_kernel(%arg0: i32, %arg1: i32, %arg2: memref<1x8x128xf32, #tpu.memory_space<vmem>>, %arg3: memref<8x2xf32, #tpu.memory_space<vmem>>, %arg4: memref<2x8xf32, #tpu.memory_space<vmem>>, %arg5: memref<1x8x1xf32, #tpu.memory_space<vmem>>, %arg6: memref<1x8xf32, #tpu.memory_space<vmem>>) attributes {dimension_semantics = [#tpu.dimension_semantics<parallel>, #tpu.dimension_semantics<arbitrary>], iteration_bounds = array<i64: 2, 2>, scalar_prefetch = 0 : i64, scratch_operands = 1 : i64, tpu.core_type = #tpu.core_type<tc>, window_params = [{transform_indices = @transform_0, window_bounds = array<i64: 1, 8, 128>}, {pipeline_mode = #tpu.pipeline_mode<synchronous>, transform_indices = @transform_1, window_bounds = array<i64: 8, 2>}, {pipeline_mode = #tpu.pipeline_mode<synchronous>, transform_indices = @transform_2, window_bounds = array<i64: 2, 8>}, {transform_indices = @transform_3, window_bounds = array<i64: 1, 8, 1>}]} {
    %c0_i32 = arith.constant 0 : i32
    %0 = arith.cmpi eq, %arg1, %c0_i32 : i32
    %1 = arith.extui %0 : i1 to i32
    %c0_i32_0 = arith.constant 0 : i32
    %2 = arith.cmpi ne, %1, %c0_i32_0 : i32
    scf.if %2 {
      %cst_8 = arith.constant 0.000000e+00 : f32
      %11 = vector.broadcast %cst_8 : f32 to vector<1x8xf32>
      %c0_9 = arith.constant 0 : index
      %c0_10 = arith.constant 0 : index
      %12 = vector.load %arg6[%c0_9, %c0_10] : memref<1x8xf32, #tpu.memory_space<vmem>>, vector<1x8xf32>
      tpu.vector_store %arg6[%c0_9, %c0_10], %11 {strides = array<i32>} : memref<1x8xf32, #tpu.memory_space<vmem>>, vector<1x8xf32>,
    } else {
    }
    %c0 = arith.constant 0 : index
    %c0_1 = arith.constant 0 : index
    %c0_2 = arith.constant 0 : index
    %3 = vector.load %arg2[%c0, %c0_1, %c0_2] : memref<1x8x128xf32, #tpu.memory_space<vmem>>, vector<1x8x128xf32>
    %c0_3 = arith.constant 0 : index
    %c0_4 = arith.constant 0 : index
    %4 = vector.load %arg6[%c0_3, %c0_4] : memref<1x8xf32, #tpu.memory_space<vmem>>, vector<1x8xf32>
    %cst = arith.constant dense<0.000000e+00> : vector<1x8xf32>
    %5 = vector.multi_reduction <add>, %3, %cst [2] : vector<1x8x128xf32> to vector<1x8xf32>
    %6 = arith.addf %4, %5 : vector<1x8xf32>
    %c0_5 = arith.constant 0 : index
    %c0_6 = arith.constant 0 : index
    %7 = vector.load %arg6[%c0_5, %c0_6] : memref<1x8xf32, #tpu.memory_space<vmem>>, vector<1x8xf32>
    tpu.vector_store %arg6[%c0_5, %c0_6], %6 {strides = array<i32>} : memref<1x8xf32, #tpu.memory_space<vmem>>, vector<1x8xf32>,
    %c1_i32 = arith.constant 1 : i32
    %8 = arith.cmpi eq, %arg1, %c1_i32 : i32
    %9 = arith.extui %8 : i1 to i32
    %c0_i32_7 = arith.constant 0 : i32
    %10 = arith.cmpi ne, %9, %c0_i32_7 : i32
    scf.if %10 {
      %c0_8 = arith.constant 0 : index
      %c0_9 = arith.constant 0 : index
      %11 = vector.load %arg6[%c0_8, %c0_9] : memref<1x8xf32, #tpu.memory_space<vmem>>, vector<1x8xf32>
      %cst_10 = arith.constant 3.906250e-03 : f32
      %12 = vector.broadcast %cst_10 : f32 to vector<1x8xf32>
      %13 = arith.mulf %11, %12 : vector<1x8xf32>
      %c0_11 = arith.constant 0 : index
      %c0_12 = arith.constant 0 : index
      %14 = vector.load %arg3[%c0_11, %c0_12] : memref<8x2xf32, #tpu.memory_space<vmem>>, vector<8x2xf32>
      %cst_13 = arith.constant dense<0.000000e+00> : vector<1x2xf32>
      %15 = tpu.matmul %13, %14, %cst_13 {dimension_numbers = #tpu.dot_dimension_numbers<[1], [0], [0], [1], [0, 0, 1, 1], [], []>} : vector<1x8xf32>, vector<8x2xf32>, vector<1x2xf32> -> vector<1x2xf32>
      %cst_14 = arith.constant 0.000000e+00 : f32
      %16 = vector.broadcast %cst_14 : f32 to vector<1x2xf32>
      %17 = arith.maximumf %15, %16 : vector<1x2xf32>
      %c0_15 = arith.constant 0 : index
      %c0_16 = arith.constant 0 : index
      %18 = vector.load %arg4[%c0_15, %c0_16] : memref<2x8xf32, #tpu.memory_space<vmem>>, vector<2x8xf32>
      %cst_17 = arith.constant dense<0.000000e+00> : vector<1x8xf32>
      %19 = tpu.matmul %17, %18, %cst_17 {dimension_numbers = #tpu.dot_dimension_numbers<[1], [0], [0], [1], [0, 0, 1, 1], [], []>} : vector<1x2xf32>, vector<2x8xf32>, vector<1x8xf32> -> vector<1x8xf32>
      %20 = arith.negf %19 : vector<1x8xf32>
      %21 = math.exp %20 : vector<1x8xf32>
      %cst_18 = arith.constant 1.000000e+00 : f32
      %22 = vector.broadcast %cst_18 : f32 to vector<1x8xf32>
      %23 = arith.addf %22, %21 : vector<1x8xf32>
      %24 = arith.divf %22, %23 : vector<1x8xf32>
      %25 = vector.shape_cast %24 : vector<1x8xf32> to vector<1x8x1xf32>
      %c0_19 = arith.constant 0 : index
      %c0_20 = arith.constant 0 : index
      %c0_21 = arith.constant 0 : index
      %26 = vector.load %arg5[%c0_19, %c0_20, %c0_21] : memref<1x8x1xf32, #tpu.memory_space<vmem>>, vector<1x8x1xf32>
      tpu.vector_store %arg5[%c0_19, %c0_20, %c0_21], %25 {strides = array<i32>} : memref<1x8x1xf32, #tpu.memory_space<vmem>>, vector<1x8x1xf32>,
    } else {
    }
    return
  }
  func.func @transform_0(%arg0: i32, %arg1: i32) -> (i32, i32, i32) {
    %c0_i32 = arith.constant 0 : i32
    %c0_i32_0 = arith.constant 0 : i32
    return %arg0, %c0_i32, %arg1 : i32, i32, i32
  }
  func.func @transform_1(%arg0: i32, %arg1: i32) -> (i32, i32) {
    %c0_i32 = arith.constant 0 : i32
    %c0_i32_0 = arith.constant 0 : i32
    %c0_i32_1 = arith.constant 0 : i32
    return %c0_i32, %c0_i32_0 : i32, i32
  }
  func.func @transform_2(%arg0: i32, %arg1: i32) -> (i32, i32) {
    %c0_i32 = arith.constant 0 : i32
    %c0_i32_0 = arith.constant 0 : i32
    %c0_i32_1 = arith.constant 0 : i32
    return %c0_i32, %c0_i32_0 : i32, i32
  }
  func.func @transform_3(%arg0: i32, %arg1: i32) -> (i32, i32, i32) {
    %c0_i32 = arith.constant 0 : i32
    %c0_i32_0 = arith.constant 0 : i32
    %c0_i32_1 = arith.constant 0 : i32
    return %arg0, %c0_i32, %c0_i32_0 : i32, i32, i32
  }
}

</mosaic_0001>

<bundles_post_ra>
// kernel: tpu_custom_call.1
= control target key start
LH: loop header
LB: loop body
LE: loop exit
PB: predicated region body
PF: predicated region fallthrough
CT: control target
= control target key end

     0   :  { %8 = vsyncpa [#allocation4], 0  ;;  %s962_s0 = inlined_call_operand.hbm [shape: f32[2,8,256], index: 0, kind: input, shape index: {}]   ;;  %s963_s1 = inlined_call_operand.vmem [shape: f32[8,2], index: 1, kind: input, shape index: {}]   ;;  %s964_s2 = inlined_call_operand.vmem [shape: f32[2,8], index: 2, kind: input, shape index: {}]   ;;  %s965_s3 = inlined_call_operand.vmem [shape: f32[2,8,1], index: 3, kind: output, shape index: {}]  }
   0x1   :  { %10 = vsyncpa [#allocation4 + $0x1], 0  ;;  %s810_s12 = smov 0   ;;  %s812_s13 = smov 0  }
   0x2   :  { %s814_s14 = smov 0   ;;  %s816_s15 = smov 0  }
   0x3   :  { %s818_s16 = smov 0   ;;  %s820_s17 = smov 0  }
   0x4   :  { %s822_s18 = smov 0   ;;  %s824_s19 = smov 0  }
   0x5 LB: > { %s575_s20 = sadd.s32 4294967295, %s782_s19   ;;  %s25_s21 = sadd.s32 1, %s774_s17  ;;  %s782_s19 = sphi %s824_s19, %s16_s19   ;;  %s778_s18 = sphi %s822_s18, %s975_s18   ;;  %s774_s17 = sphi %s820_s17, %s974_s17   ;;  %s770_s16 = sphi %s818_s16, %s973_s16   ;;  %s766_s15 = sphi %s816_s15, %s972_s15   ;;  %s762_s14 = sphi %s814_s14, %s971_s14   ;;  %s758_s13 = sphi %s812_s13, %s970_s13   ;;  %s754_s12 = sphi %s810_s12, %s969_s12  }
   0x6   : > { %p26_p0 = scmp.ge.s32.totalorder %s25_s21, 2  ;;  %s28_s22 = sadd.s32 1, %s778_s18 }
   0x7   : > { %s37_s23 = sadd.s32 1, %s762_s14  ;;  %p44_p1 = scmp.ne.s32.totalorder %s762_s14, %s758_s13 }
   0x8   : > { %s977_s21 = smov (%p26_p0, %s25_s21), 0  ;;  %s979_s22 = smov (!%p26_p0, %s28_s22), %s778_s18 }
   0x9   : > { %s33_s24 = ssub.s32 %s774_s17, %s977_s21  ;;  %p45_p2 = scmp.eq.s32.totalorder %s782_s19, 0 }
   0xa   : > { %p30_p3 = scmp.ge.s32.totalorder %s979_s22, 2  ;;  %p50_p4 = scmp.ne.s32.totalorder %s758_s13, %s754_s12 }
   0xb   : > { %p861_p5 = por %p45_p2, %p44_p1  ;;  %p51_p6 = scmp.eq.s32.totalorder %s575_s20, 0 }
   0xc   : > { %s981_s22 = smov (%p30_p3, %s979_s22), 0  ;;  %p613_p8 = scmp.lt.s32.totalorder %s782_s19, 4 }
   0xd   : > { %p867_p7 = por %p51_p6, %p50_p4  ;;  %s32_s27 = ssub.s32 %s778_s18, %s981_s22 }
   0xe   : > { %s34_s28 = sor.u32 %s33_s24, %s32_s27  ;;  %s148_s29 = sand.u32 1, %s762_s14  }
   0xf   : > { %p35_p9 = scmp.eq.s32.totalorder %s34_s28, 0  ;;  %s579_s30 = sshll.u32 %s148_s29, 3 }
  0x10   : > { %s580_s4 = sshll.u32 %s778_s18, 1  ;;  %s152_s8 = scalar_lea.vmem [#allocation3], %s579_s30 }
  0x11   : > { %s877_s5 = scalar_select %p35_p9, %s762_s14, %s37_s23  }
  0x12   : > { %s157_s6 = sadd.s32 %s774_s17, %s580_s4  ;;  %s161_s9 = sshll.u32 %s152_s8, 4  ;;  %s162_s9 = int_to_ptr.vmem [resolvable:$true] %s161_s9 }
  0x13   : > { %s581_s7 = sshll.u32 %s157_s6, 7  ;;  %p887_p10 = pnand %p613_p8, %p861_p5 }
  0x14   : > { %s159_s12 = scalar_lea.hbm %s962_s0, %s581_s7  ;;  %p582_p11 = scmp.ge.s32.totalorder %s782_s19, 1 }
  0x15   : > { %p166_p12 = scmp.lt.s32.totalorder %s782_s19, 5  ;;  %s149_s23 = scalar_lea.sflag [#allocation4], %s148_s29 }
  0x16   : > { %p690_p13 = pneg %p887_p10  ;;  %s701_s24 = scalar_lea.vmem %s162_s9, 128 }
  0x17   : > { %p702_p0 = scmp.ne.s32.totalorder %s162_s9, %s701_s24  ;;  %s784_s27 = smov [#allocation3]  }
  0x18   : > { %s706_s28 = sshll.u32 %s784_s27, 4  ;;  %s707_s28 = int_to_ptr.vmem [resolvable:$false] %s706_s28 }
  0x19   : > { %p704_p1 = pnand %p702_p0, %p690_p13  ;;  %s708_s30 = scalar_lea.vmem %s707_s28, 256 }
  0x1a   : > { %p709_p3 = scmp.lt.s32.totalorder %s162_s9, %s707_s28  ;;  %p710_p4 = scmp.lt.s32.totalorder %s708_s30, %s701_s24 }
  0x1b   : > { %p705_p2 = pneg %p704_p1 }
  0x1c   : > { %p711_p5 = por %p710_p4, %p709_p3 }
  0x1e   : > { %p712_p6 = pnand %p711_p5, %p705_p2 }
  0x20   : > { %715 = shalt.err (!%p712_p6)
}
  0x21   : > { %612 = dma.hbm_to_vmem [thread:$0]  (!%p887_p10), %s159_s12, 128, %s162_s9, %s149_s23  }
  0x22   : > { %p167_p8 = pnand %p582_p11, %p166_p12 }
  0x23   : > { %s172_s25 = sand.u32 (!%p167_p8), 1, %s758_s13  }
  0x24   : > { %170 = sbr.rel (%p167_p8) target bundleno = 883 (0x373), region = 32  ;;  %s583_s29 = sshll.u32 (!%p167_p8), %s172_s25, 3 }
  0x25   : > { %s173_s4 = scalar_lea.sflag (!%p167_p8), [#allocation4], %s172_s25  ;;  %s176_s6 = scalar_lea.vmem (!%p167_p8), [#allocation3], %s583_s29 }
  0x29   : > { %749 = dma.done.wait (%p867_p7), %s173_s4, 128  }
  0x2a   : > { %751 = vsyncadd (%p867_p7), %s173_s4, 4294967168  ;;  %p198_p9 = scmp.lt.s32.totalorder %s770_s16, 1  ;;  %p585_p10 = scmp.ne.s32.totalorder %s766_s15, 0 }
  0x2c   : > { %s983_s16 = smov (!%p198_p9, %s770_s16), 1  ;;  %205 = sbr.rel (%p585_p10) target bundleno = 51 (0x33), region = 40 }
  0x2d   : > { %s584_s7 = sshll.u32 %s983_s16, 3 }
  0x2e   : > { %s911_s10 = scalar_lea.vmem %s965_s3, %s584_s7 }
  0x31   : > { %vm206_vm0 = vcmask 57344   ;;  %v785_v0 = vmov 0.0  }
  0x32   : > { %207 = vst.msk [vmem:[#allocation2] sm:$0x1] %vm206_vm0, %v785_v0 }
  0x33 PF: > { %v208_v1 = vld [vmem:[%s176_s6] sm:$0xff]  ;;  %v786_v2 = vmov 0   ;;  %v213_v3 = vlaneseq  ;;  %v787_v7 = vmov 1966171168   ;;  %vm319_vm1 = vcmask 57344   ;;  %p586_p7 = scmp.ne.s32.totalorder %s766_s15, 1 }
  0x34   : > { %210 = vadd.xlane.f32.xlu0 %v208_v1  ;;  %v250_v8 = vunpack.c.l.s4 %v787_v7 }
  0x35   : > { %683 = vset.pattern.permute.xlu0 %v786_v2  ;;  %v914_v4 = vshrl.u32 %v213_v3, 7  ;;  %v298_v5 = vand.u32 127, %v213_v3 }
  0x36   : > { %v251_v9 = vunpack.c.0.s8 %v250_v8 }
  0x37   : > { %v301_v6 = vsub.s32 %v298_v5, %v914_v4  ;;  %v215_v10 = vsub.s32 0, %v914_v4  ;;  %v219_v11 = vsub.s32 1, %v914_v4  ;;  %v223_v12 = vsub.s32 2, %v914_v4 }
  0x38   : > { %v227_v13 = vsub.s32 3, %v914_v4  ;;  %v231_v14 = vsub.s32 4, %v914_v4  ;;  %v235_v15 = vsub.s32 5, %v914_v4  ;;  %v239_v16 = vsub.s32 6, %v914_v4 }
  0x39   : > { %v243_v17 = vsub.s32 7, %v914_v4  ;;  %v254_v19 = vsub.s32 %v251_v9, %v914_v4  ;;  %v209_v44 = vld [vmem:[#allocation2] sm:$0x1] }
  0xbd   : > { %v211_v18 = vpop.xlane.xlu0 %210 }
  0xbe   : > { %v216_v20 = vrot.slane %v211_v18, %v215_v10  ;;  %v220_v21 = vrot.slane %v211_v18, %v219_v11  ;;  %v224_v22 = vrot.slane %v211_v18, %v223_v12  ;;  %v228_v23 = vrot.slane %v211_v18, %v227_v13 }
  0xbf   : > { %v232_v24 = vrot.slane %v211_v18, %v231_v14  ;;  %v236_v25 = vrot.slane %v211_v18, %v235_v15  ;;  %v240_v26 = vrot.slane %v211_v18, %v239_v16  ;;  %v244_v27 = vrot.slane %v211_v18, %v243_v17 }
  0xc0   : > { %v245_v28 = vcombine.low %v216_v20, %v220_v21  ;;  %v246_v29 = vcombine.low %v224_v22, %v228_v23 }
  0xc1   : > { %v247_v30 = vcombine.low %v232_v24, %v236_v25  ;;  %v248_v31 = vcombine.low %v240_v26, %v244_v27 }
  0xc2   : > { %v255_v32 = vrot.slane %v245_v28, %v254_v19  ;;  %v262_v33 = vrot.slane %v246_v29, %v254_v19 }
  0xc3   : > { %v269_v34 = vrot.slane %v247_v30, %v254_v19  ;;  %v276_v35 = vrot.slane %v248_v31, %v254_v19 }
  0xc4   : > { %v277_v36 = vcombine.low %v255_v32, %v262_v33 }
  0xc5   : > { %v278_v37 = vcombine.low %v269_v34, %v276_v35 }
  0xc6   : > { %v285_v38 = vrot.slane %v277_v36, %v254_v19 }
  0xc7   : > { %v292_v39 = vrot.slane %v278_v37, %v254_v19 }
  0xc9   : > { %v293_v40 = vcombine.low %v285_v38, %v292_v39 }
  0xcb   : > { %295 = vperm.xlu0 %683, %v293_v40  }
 0x146   : > { %v296_v41 = vpop.permute.xlu0 %295 }
 0x147   : > { %v302_v42 = vrot.slane %v296_v41, %v301_v6 }
 0x149   : > { %v309_v43 = vrot.slane %v302_v42, %v254_v19 }
 0x14b   : > { %v316_v45 = vrot.slane %v309_v43, %v254_v19  ;;  %324 = sbr.rel (%p586_p7) target bundleno = 883 (0x373), region = 44 }
 0x14d   : > { %v318_v46 = vadd.f32 %v316_v45, %v209_v44 }
 0x14f   : > { %320 = vst.msk [vmem:[#allocation2] sm:$0x1] %vm319_vm1, %v318_v46 }
 0x150   : > { %v327_v47 = vld [vmem:[%s963_s1] sm:$0xff]  ;;  %vm328_vm2 = vcmask 64512   ;;  %v788_v49 = vmov 0.0   ;;  %vm789_vm3 = vmmov 0   ;;  %vm408_vm4 = vcmask 1041408  }
 0x151   : > { %597 = vmatprep.subr.mxu0 %v788_v49  ;;  %599 = vmatprep.mubr.msk.f32.mxu0 %vm789_vm3, %v788_v49  ;;  %v403_v51 = vld [vmem:[%s964_s2] sm:$0x3]  ;;  %vm404_vm5 = vcmask 15360   ;;  %vm495_vm6 = vcmask 7168  }
 0x152   : > { %598 = vmatpush3.msra.mxu0 %v327_v47  ;;  %602 = vmatprep.subr.mxu1 %v788_v49 }
 0x153   : > { %604 = vmatprep.mubr.msk.f32.mxu1 %vm789_vm3, %v788_v49  ;;  %603 = vmatpush3.msk.msra.mxu1 %vm408_vm4, %v403_v51 }
 0x156   : > { %v325_v48 = vld [vmem:[#allocation2] sm:$0x1] }
 0x157   : > { %v326_v50 = vmul.f32 0.00390625, %v325_v48 }
 0x159   : > { %600 = vmatmul.mubr.msk.f32.vlgmr.msra.gmra.mxu0 %vm328_vm2, %v326_v50 }
 0x219   : > { %v398_v52 = vpop.f32.mrf.mxu0 }
 0x21a   : > { %v402_v53 = vmax.f32 %v398_v52, 0.0 }
 0x21b   : > { %v601_v54 = vpop.f32.mrf.mxu0 }
 0x21c   : > { %605 = vmatmul.mubr.msk.f32.vlgmr.msra.gmra.mxu1 %vm404_vm5, %v402_v53 }
 0x2dc   : > { %v478_v55 = vpop.f32.mrf.mxu1 }
 0x2dd   : > { %v590_v56 = vmul.f32 -1.442695, %v478_v55 }
 0x2de   : > { %v606_v57 = vpop.f32.mrf.mxu1 }
 0x2df   : > { %684 = vpow2.f32 %v590_v56 }
 0x2ec   : > { %v685_v58 = vpop.eup %684 }
 0x2ed   : > { %v485_v59 = vadd.f32 1.0, %v685_v58 }
 0x2ef   : > { %686 = vrcp.f32 %v485_v59 }
 0x2fc   : > { %v687_v60 = vpop.eup %686 }
 0x2fd   : > { %v491_v61 = vrot.slane %v687_v60, %v215_v10 }
 0x2ff   : > { %493 = vbcast.lane.b32.xlu0 %v491_v61, 256 }
 0x371   : > { %v494_v62 = vpop.permute.xlu0 %493 }
 0x372   : > { %496 = vst.msk [vmem:[%s911_s10] sm:$0xff] %vm495_vm6, %v494_v62 }
 0x373 PF: > { %s16_s19 = sadd.s32 1, %s782_s19   ;;  %s969_s12 = smov %s758_s13 }
 0x374   : > { %p13_p11 = scmp.ge.s32.totalorder %s16_s19, 6   ;;  %s970_s13 = smov %s762_s14 }
 0x375   : > { %s971_s14 = smov %s877_s5  ;;  %s972_s15 = smov %s774_s17 }
 0x376   : > { %s973_s16 = smov %s778_s18  ;;  %s974_s17 = smov %s977_s21 }
 0x377   : > { %s975_s18 = smov %s981_s22  ;;  %15 = sbr.rel (!%p13_p11) target bundleno = 5 (0x5), region = 80 }
 0x37c   :  { %516 = vsyncpa [#allocation4], 1 }
 0x37d   :  { %518 = vsyncpa [#allocation4 + $0x1], 1 }

</bundles_post_ra>
